<compile_context>
chip_gen: v5e
topology: v5e:2x2
jax: 0.10.0
libtpu: 0.0.40
codegen_flags: <defaults>
</compile_context>

<pallas_src>
import functools

import jax
import jax.numpy as jnp
from jax.experimental import pallas as pl
from jax.experimental.pallas import tpu as pltpu


# Flip to jnp.bfloat16 on v6e/v7x at real ResNet channel counts (2x MXU rate,
# half the HBM/VMEM traffic; keep preferred_element_type=f32 accumulation and
# the post-matmul elementwise math in f32 on v5e).  Kept float32 here so the
# toy-shape tolerance check against the f32 reference stays tight.
MATMUL_DTYPE = jnp.float32


def identity_block_kernel(x_ref, w1_ref, w2_ref, w3_ref, mask_ref,
                          b1_ref, b2_ref, b3_ref, out_ref, taps_ref,
                          *, W, KH, KW):
    """One grid step processes a slab of whole images.

      x_ref   : (Cin, S)          S = images_per_step * H * W   (lane-dense)
      w1_ref  : (F1, Cin)         1x1 conv, pre-transposed, BN scale folded in
      w2_ref  : (F2, KH*KW*F1)    fxf conv, im2col-flattened, BN scale folded in
      w3_ref  : (F3, F2)          1x1 conv, pre-transposed, BN scale folded in
      mask_ref: (KH*KW, S)        precomputed zero-padding / boundary masks
      b*_ref  : (C, 1)            folded BatchNorm bias columns
      out_ref : (F3, S)
      taps_ref: (KH*KW*F1, S)     VMEM scratch for the im2col slab
    """
    S = x_ref.shape[1]
    F1 = w1_ref.shape[0]
    ph, pw = (KH - 1) // 2, (KW - 1) // 2

    # ---- stage 1: 1x1 conv as (F1,Cin)@(Cin,S) + folded BN bias + ReLU -----
    y1 = jnp.dot(w1_ref[...], x_ref[...].astype(MATMUL_DTYPE),
                 preferred_element_type=jnp.float32)
    y1 = jnp.maximum(y1 + b1_ref[...], 0.0)                          # (F1, S)

    # ---- stage 2: fxf "same" conv via im2col (lane rolls + precomputed ----
    # masks).  Output pixel p=(n,h,w) needs y1 at (h+dh, w+dw); on the
    # flattened lane axis that is p + dh*W + dw.  pltpu.roll (XLU) supplies
    # the circular shift; the mask row zeroes wrapped pixels, which is exactly
    # the conv zero padding and also stops leakage across row / image
    # boundaries.  Taps are written straight into VMEM scratch (no concat).
    # TODO(synk): on v7x, accumulating 9 per-tap matmuls via the MRB would
    # avoid the taps buffer; kept the single K=KH*KW*F1 matmul for v5e/v6e.
    for kh in range(KH):
        dh = kh - ph
        for kw in range(KW):
            dw = kw - pw
            t = kh * KW + kw
            delta = dh * W + dw
            shifted = pltpu.roll(y1, shift=(-delta) % S, axis=1) if delta else y1
            taps_ref[pl.ds(t * F1, F1), :] = (
                shifted * mask_ref[pl.ds(t, 1), :]).astype(taps_ref.dtype)

    y2 = jnp.dot(w2_ref[...], taps_ref[...],
                 preferred_element_type=jnp.float32)                 # (F2, S)
    y2 = jnp.maximum(y2 + b2_ref[...], 0.0)

    # ---- stage 3: 1x1 conv + folded BN bias, residual add, final ReLU ------
    y3 = jnp.dot(w3_ref[...], y2.astype(MATMUL_DTYPE),
                 preferred_element_type=jnp.float32) + b3_ref[...]   # (F3, S)
    # Re-read the shortcut from the VMEM block here (no long live range).
    out_ref[...] = jnp.maximum(y3 + x_ref[...].astype(jnp.float32),
                               0.0).astype(out_ref.dtype)


def fold_bn(gamma, beta, mean, var, eps=1e-5):
    scale = gamma / jnp.sqrt(var + eps)
    bias = beta - mean * scale
    return scale, bias                                               # 1-D (C,)


def _pick_block_n(N, HW, target_lanes=2048):
    """Images per grid step.

    Constraints / preferences:
      * block_n must divide N (no ragged final block),
      * if grid > 1, block_n*HW must be a multiple of 128 (BlockSpec lane rule),
      * prefer grid >= 2 so the 'parallel' axis can shard across both v7x TCs,
      * keep the lane axis around target_lanes (amortize ~0.35us/step overhead
        without blowing the VMEM budget).  Raise target_lanes on v6e (128 MiB
        VMEM); lower it on v7x (64 MiB physical, 32 MiB scoped default).
    """
    candidates = []
    for bn in range(1, N + 1):
        if N % bn:
            continue
        lanes = bn * HW
        grid = N // bn
        if grid > 1 and lanes % 128 != 0:
            continue                      # would violate lane divisibility
        candidates.append((bn, lanes, grid))
    def score(c):
        bn, lanes, grid = c
        return (grid >= 2, lanes <= max(target_lanes, HW), bn)
    return max(candidates, key=score)[0]


@jax.jit
def identity_block(x_nchw, w1, w2, w3, s1, b1, s2, b2, s3, b3):
    N, Cin, H, W = x_nchw.shape
    F1 = w1.shape[1]
    KH, KW, _, F2 = w2.shape
    F3 = w3.shape[1]
    assert F3 == Cin, "identity block needs F3 == in_channel for the residual add"

    # Layout plumbing outside the kernel: channels on sublanes, flattened
    # (n, h, w) spatial on the lane axis -> lane-dense compute, unmasked stores.
    # TODO(synk): if the surrounding model allows, keep activations in
    # (C, N*H*W) end-to-end to avoid these two HBM-roundtrip transposes.
    x_cs = jnp.transpose(x_nchw, (1, 0, 2, 3)).reshape(Cin, N * H * W)

    # Fold the BN scale into the conv weights; only the bias survives as a
    # per-channel column applied in the kernel.
    w1f = (jnp.transpose(w1) * s1[:, None]).astype(MATMUL_DTYPE)      # (F1, Cin)
    w2f = (jnp.transpose(w2, (3, 0, 1, 2)).reshape(F2, KH * KW * F1)
           * s2[:, None]).astype(MATMUL_DTYPE)                        # (F2, KH*KW*F1)
    w3f = (jnp.transpose(w3) * s3[:, None]).astype(MATMUL_DTYPE)      # (F3, F2)
    b1c = b1.reshape(-1, 1).astype(jnp.float32)
    b2c = b2.reshape(-1, 1).astype(jnp.float32)
    b3c = b3.reshape(-1, 1).astype(jnp.float32)

    block_n = _pick_block_n(N, H * W)
    S_blk = block_n * H * W
    grid = (N // block_n,)

    # Precompute the KH*KW boundary masks (pure geometry; identical for every
    # grid step because every block holds whole images).
    ph, pw = (KH - 1) // 2, (KW - 1) // 2
    pos = jnp.arange(S_blk, dtype=jnp.int32)
    h_idx = (pos // W) % H
    w_idx = pos % W
    mask_rows = []
    for kh in range(KH):
        dh = kh - ph
        for kw in range(KW):
            dw = kw - pw
            mask_rows.append((h_idx + dh >= 0) & (h_idx + dh < H) &
                             (w_idx + dw >= 0) & (w_idx + dw < W))
    mask = jnp.stack(mask_rows, axis=0).astype(MATMUL_DTYPE)          # (KH*KW, S_blk)

    kernel = functools.partial(identity_block_kernel, W=W, KH=KH, KW=KW)

    def full2d(a):                    # whole-array block, grid-invariant
        return pl.BlockSpec(a.shape, lambda i: (0, 0))

    # Explicit VMEM budget (f32): double-buffered x/out blocks + taps scratch
    # + mask + intermediates + weights; ask for it (with headroom) rather than
    # relying on the 32 MiB scoped default.  Capped at 64 MiB for v7x safety.
    bytes_per = 4
    vmem_est = bytes_per * S_blk * (2 * (Cin + F3) + KH * KW * F1 + KH * KW
                                    + 2 * (F1 + F2)) \
        + bytes_per * (F1 * Cin + F2 * KH * KW * F1 + F3 * F2 + F1 + F2 + F3)
    vmem_limit = int(min(64 * 2**20, max(32 * 2**20, 2 * vmem_est)))

    out_cs = pl.pallas_call(
        kernel,
        out_shape=jax.ShapeDtypeStruct((F3, N * H * W), x_nchw.dtype),
        grid=grid,
        in_specs=[
            pl.BlockSpec((Cin, S_blk), lambda i: (0, i)),
            full2d(w1f), full2d(w2f), full2d(w3f), full2d(mask),
            full2d(b1c), full2d(b2c), full2d(b3c),
        ],
        out_specs=pl.BlockSpec((F3, S_blk), lambda i: (0, i)),
        scratch_shapes=[pltpu.VMEM((KH * KW * F1, S_blk), MATMUL_DTYPE)],
        compiler_params=pltpu.CompilerParams(
            dimension_semantics=("parallel",),
            vmem_limit_bytes=vmem_limit),
    )(x_cs, w1f, w2f, w3f, mask, b1c, b2c, b3c)

    return jnp.transpose(out_cs.reshape(F3, N, H, W), (1, 0, 2, 3))   # -> NCHW


def reference_forward(x_nchw, w1, w2, w3, s1, b1, s2, b2, s3, b3):
    """Plain-JAX reference (same math, no Pallas)."""
    x = jnp.transpose(x_nchw, (0, 2, 3, 1))
    N, H, W, Cin = x.shape
    KH, KW = w2.shape[0], w2.shape[1]
    y1 = jnp.maximum(jnp.einsum('nhwc,cf->nhwf', x, w1) * s1 + b1, 0.0)
    ph, pw = (KH - 1) // 2, (KW - 1) // 2
    yp = jnp.pad(y1, ((0, 0), (ph, ph), (pw, pw), (0, 0)))
    acc = 0.0
    for kh in range(KH):
        for kw in range(KW):
            acc = acc + jnp.einsum('nhwc,cf->nhwf',
                                   yp[:, kh:kh + H, kw:kw + W, :], w2[kh, kw])
    y2 = jnp.maximum(acc * s2 + b2, 0.0)
    y3 = jnp.einsum('nhwc,cf->nhwf', y2, w3) * s3 + b3
    out = jnp.maximum(y3 + x, 0.0)
    return jnp.transpose(out, (0, 3, 1, 2))


if __name__ == "__main__":
    # Module config: IndentityBlock(in_channel=4, f=3, filters=(8, 8, 4)),
    # "same" spatial size so the residual add is valid.
    N, Cin, H, W = 2, 4, 16, 16
    f = 3
    F1, F2, F3 = 8, 8, 4          # F3 == Cin so the residual add is valid

    key = jax.random.PRNGKey(0)
    ks = jax.random.split(key, 16)
    x = jax.random.normal(ks[0], (N, Cin, H, W), jnp.float32)

    # Conv weights (no bias, matching bias=False)
    w1 = 0.2 * jax.random.normal(ks[1], (Cin, F1), jnp.float32)
    w2 = 0.2 * jax.random.normal(ks[2], (f, f, F1, F2), jnp.float32)
    w3 = 0.2 * jax.random.normal(ks[3], (F2, F3), jnp.float32)

    # BatchNorm params (deterministic), folded to scale/bias (inference mode)
    def bn_params(kg, kb, km, kv, C):
        gamma = 1.0 + 0.1 * jax.random.normal(kg, (C,), jnp.float32)
        beta = 0.1 * jax.random.normal(kb, (C,), jnp.float32)
        mean = 0.1 * jax.random.normal(km, (C,), jnp.float32)
        var = 0.5 + jax.random.uniform(kv, (C,), jnp.float32)
        return fold_bn(gamma, beta, mean, var)

    s1, b1 = bn_params(ks[4], ks[5], ks[6], ks[7], F1)
    s2, b2 = bn_params(ks[8], ks[9], ks[10], ks[11], F2)
    s3, b3 = bn_params(ks[12], ks[13], ks[14], ks[15], F3)

    out = identity_block(x, w1, w2, w3, s1, b1, s2, b2, s3, b3)
    out = jax.block_until_ready(out)

    ref = reference_forward(x, w1, w2, w3, s1, b1, s2, b2, s3, b3)
    assert out.shape == (N, Cin, H, W) and out.dtype == jnp.float32
    assert jnp.allclose(out, ref, rtol=1e-2, atol=1e-2), "mismatch vs reference"

    print("KERNEL_OK")
</pallas_src>

<mosaic_0001>
module attributes {stable_mosaic.version = 11 : i64} {
  func.func @identity_block_kernel(%arg0: i32, %arg1: memref<4x256xf32, #tpu.memory_space<vmem>>, %arg2: memref<8x4xf32, #tpu.memory_space<vmem>>, %arg3: memref<8x72xf32, #tpu.memory_space<vmem>>, %arg4: memref<4x8xf32, #tpu.memory_space<vmem>>, %arg5: memref<9x256xf32, #tpu.memory_space<vmem>>, %arg6: memref<8x1xf32, #tpu.memory_space<vmem>>, %arg7: memref<8x1xf32, #tpu.memory_space<vmem>>, %arg8: memref<4x1xf32, #tpu.memory_space<vmem>>, %arg9: memref<4x256xf32, #tpu.memory_space<vmem>>, %arg10: memref<72x256xf32, #tpu.memory_space<vmem>>) attributes {dimension_semantics = [#tpu.dimension_semantics<parallel>], iteration_bounds = array<i64: 2>, scalar_prefetch = 0 : i64, scratch_operands = 1 : i64, tpu.core_type = #tpu.core_type<tc>, window_params = [{transform_indices = @transform_0, window_bounds = array<i64: 4, 256>}, {pipeline_mode = #tpu.pipeline_mode<synchronous>, transform_indices = @transform_1, window_bounds = array<i64: 8, 4>}, {pipeline_mode = #tpu.pipeline_mode<synchronous>, transform_indices = @transform_2, window_bounds = array<i64: 8, 72>}, {pipeline_mode = #tpu.pipeline_mode<synchronous>, transform_indices = @transform_3, window_bounds = array<i64: 4, 8>}, {pipeline_mode = #tpu.pipeline_mode<synchronous>, transform_indices = @transform_4, window_bounds = array<i64: 9, 256>}, {pipeline_mode = #tpu.pipeline_mode<synchronous>, transform_indices = @transform_5, window_bounds = array<i64: 8, 1>}, {pipeline_mode = #tpu.pipeline_mode<synchronous>, transform_indices = @transform_6, window_bounds = array<i64: 8, 1>}, {pipeline_mode = #tpu.pipeline_mode<synchronous>, transform_indices = @transform_7, window_bounds = array<i64: 4, 1>}, {transform_indices = @transform_8, window_bounds = array<i64: 4, 256>}]} {
    %c0 = arith.constant 0 : index
    %c0_0 = arith.constant 0 : index
    %0 = vector.load %arg2[%c0, %c0_0] : memref<8x4xf32, #tpu.memory_space<vmem>>, vector<8x4xf32>
    %c0_1 = arith.constant 0 : index
    %c0_2 = arith.constant 0 : index
    %1 = vector.load %arg1[%c0_1, %c0_2] : memref<4x256xf32, #tpu.memory_space<vmem>>, vector<4x256xf32>
    %cst = arith.constant dense<0.000000e+00> : vector<8x256xf32>
    %2 = tpu.matmul %0, %1, %cst {dimension_numbers = #tpu.dot_dimension_numbers<[1], [0], [0], [1], [0, 0, 1, 1], [], []>} : vector<8x4xf32>, vector<4x256xf32>, vector<8x256xf32> -> vector<8x256xf32>
    %c0_3 = arith.constant 0 : index
    %c0_4 = arith.constant 0 : index
    %3 = vector.load %arg6[%c0_3, %c0_4] : memref<8x1xf32, #tpu.memory_space<vmem>>, vector<8x1xf32>
    %4 = vector.broadcast %3 : vector<8x1xf32> to vector<8x256xf32>
    %5 = arith.addf %2, %4 : vector<8x256xf32>
    %cst_5 = arith.constant 0.000000e+00 : f32
    %6 = vector.broadcast %cst_5 : f32 to vector<8x256xf32>
    %7 = arith.maximumf %5, %6 : vector<8x256xf32>
    %c17_i32 = arith.constant 17 : i32
    %8 = tpu.dynamic_rotate %7 by %c17_i32 dim 1 : vector<8x256xf32>, i32 -> vector<8x256xf32>
    %c0_6 = arith.constant 0 : index
    %c0_7 = arith.constant 0 : index
    %9 = vector.load %arg5[%c0_6, %c0_7] : memref<9x256xf32, #tpu.memory_space<vmem>>, vector<1x256xf32>
    %10 = vector.broadcast %9 : vector<1x256xf32> to vector<8x256xf32>
    %11 = arith.mulf %8, %10 : vector<8x256xf32>
    %c0_8 = arith.constant 0 : index
    %c0_9 = arith.constant 0 : index
    %12 = vector.load %arg10[%c0_8, %c0_9] : memref<72x256xf32, #tpu.memory_space<vmem>>, vector<8x256xf32>
    tpu.vector_store %arg10[%c0_8, %c0_9], %11 {strides = array<i32>} : memref<72x256xf32, #tpu.memory_space<vmem>>, vector<8x256xf32>,
    %c16_i32 = arith.constant 16 : i32
    %13 = tpu.dynamic_rotate %7 by %c16_i32 dim 1 : vector<8x256xf32>, i32 -> vector<8x256xf32>
    %c1 = arith.constant 1 : index
    %c0_10 = arith.constant 0 : index
    %14 = vector.load %arg5[%c1, %c0_10] : memref<9x256xf32, #tpu.memory_space<vmem>>, vector<1x256xf32>
    %15 = vector.broadcast %14 : vector<1x256xf32> to vector<8x256xf32>
    %16 = arith.mulf %13, %15 : vector<8x256xf32>
    %c8 = arith.constant 8 : index
    %c0_11 = arith.constant 0 : index
    %17 = vector.load %arg10[%c8, %c0_11] : memref<72x256xf32, #tpu.memory_space<vmem>>, vector<8x256xf32>
    tpu.vector_store %arg10[%c8, %c0_11], %16 {strides = array<i32>} : memref<72x256xf32, #tpu.memory_space<vmem>>, vector<8x256xf32>,
    %c15_i32 = arith.constant 15 : i32
    %18 = tpu.dynamic_rotate %7 by %c15_i32 dim 1 : vector<8x256xf32>, i32 -> vector<8x256xf32>
    %c2 = arith.constant 2 : index
    %c0_12 = arith.constant 0 : index
    %19 = vector.load %arg5[%c2, %c0_12] : memref<9x256xf32, #tpu.memory_space<vmem>>, vector<1x256xf32>
    %20 = vector.broadcast %19 : vector<1x256xf32> to vector<8x256xf32>
    %21 = arith.mulf %18, %20 : vector<8x256xf32>
    %c16 = arith.constant 16 : index
    %c0_13 = arith.constant 0 : index
    %22 = vector.load %arg10[%c16, %c0_13] : memref<72x256xf32, #tpu.memory_space<vmem>>, vector<8x256xf32>
    tpu.vector_store %arg10[%c16, %c0_13], %21 {strides = array<i32>} : memref<72x256xf32, #tpu.memory_space<vmem>>, vector<8x256xf32>,
    %c1_i32 = arith.constant 1 : i32
    %23 = tpu.dynamic_rotate %7 by %c1_i32 dim 1 : vector<8x256xf32>, i32 -> vector<8x256xf32>
    %c3 = arith.constant 3 : index
    %c0_14 = arith.constant 0 : index
    %24 = vector.load %arg5[%c3, %c0_14] : memref<9x256xf32, #tpu.memory_space<vmem>>, vector<1x256xf32>
    %25 = vector.broadcast %24 : vector<1x256xf32> to vector<8x256xf32>
    %26 = arith.mulf %23, %25 : vector<8x256xf32>
    %c24 = arith.constant 24 : index
    %c0_15 = arith.constant 0 : index
    %27 = vector.load %arg10[%c24, %c0_15] : memref<72x256xf32, #tpu.memory_space<vmem>>, vector<8x256xf32>
    tpu.vector_store %arg10[%c24, %c0_15], %26 {strides = array<i32>} : memref<72x256xf32, #tpu.memory_space<vmem>>, vector<8x256xf32>,
    %c4 = arith.constant 4 : index
    %c0_16 = arith.constant 0 : index
    %28 = vector.load %arg5[%c4, %c0_16] : memref<9x256xf32, #tpu.memory_space<vmem>>, vector<1x256xf32>
    %29 = vector.broadcast %28 : vector<1x256xf32> to vector<8x256xf32>
    %30 = arith.mulf %7, %29 : vector<8x256xf32>
    %c32 = arith.constant 32 : index
    %c0_17 = arith.constant 0 : index
    %31 = vector.load %arg10[%c32, %c0_17] : memref<72x256xf32, #tpu.memory_space<vmem>>, vector<8x256xf32>
    tpu.vector_store %arg10[%c32, %c0_17], %30 {strides = array<i32>} : memref<72x256xf32, #tpu.memory_space<vmem>>, vector<8x256xf32>,
    %c255_i32 = arith.constant 255 : i32
    %32 = tpu.dynamic_rotate %7 by %c255_i32 dim 1 : vector<8x256xf32>, i32 -> vector<8x256xf32>
    %c5 = arith.constant 5 : index
    %c0_18 = arith.constant 0 : index
    %33 = vector.load %arg5[%c5, %c0_18] : memref<9x256xf32, #tpu.memory_space<vmem>>, vector<1x256xf32>
    %34 = vector.broadcast %33 : vector<1x256xf32> to vector<8x256xf32>
    %35 = arith.mulf %32, %34 : vector<8x256xf32>
    %c40 = arith.constant 40 : index
    %c0_19 = arith.constant 0 : index
    %36 = vector.load %arg10[%c40, %c0_19] : memref<72x256xf32, #tpu.memory_space<vmem>>, vector<8x256xf32>
    tpu.vector_store %arg10[%c40, %c0_19], %35 {strides = array<i32>} : memref<72x256xf32, #tpu.memory_space<vmem>>, vector<8x256xf32>,
    %c241_i32 = arith.constant 241 : i32
    %37 = tpu.dynamic_rotate %7 by %c241_i32 dim 1 : vector<8x256xf32>, i32 -> vector<8x256xf32>
    %c6 = arith.constant 6 : index
    %c0_20 = arith.constant 0 : index
    %38 = vector.load %arg5[%c6, %c0_20] : memref<9x256xf32, #tpu.memory_space<vmem>>, vector<1x256xf32>
    %39 = vector.broadcast %38 : vector<1x256xf32> to vector<8x256xf32>
    %40 = arith.mulf %37, %39 : vector<8x256xf32>
    %c48 = arith.constant 48 : index
    %c0_21 = arith.constant 0 : index
    %41 = vector.load %arg10[%c48, %c0_21] : memref<72x256xf32, #tpu.memory_space<vmem>>, vector<8x256xf32>
    tpu.vector_store %arg10[%c48, %c0_21], %40 {strides = array<i32>} : memref<72x256xf32, #tpu.memory_space<vmem>>, vector<8x256xf32>,
    %c240_i32 = arith.constant 240 : i32
    %42 = tpu.dynamic_rotate %7 by %c240_i32 dim 1 : vector<8x256xf32>, i32 -> vector<8x256xf32>
    %c7 = arith.constant 7 : index
    %c0_22 = arith.constant 0 : index
    %43 = vector.load %arg5[%c7, %c0_22] : memref<9x256xf32, #tpu.memory_space<vmem>>, vector<1x256xf32>
    %44 = vector.broadcast %43 : vector<1x256xf32> to vector<8x256xf32>
    %45 = arith.mulf %42, %44 : vector<8x256xf32>
    %c56 = arith.constant 56 : index
    %c0_23 = arith.constant 0 : index
    %46 = vector.load %arg10[%c56, %c0_23] : memref<72x256xf32, #tpu.memory_space<vmem>>, vector<8x256xf32>
    tpu.vector_store %arg10[%c56, %c0_23], %45 {strides = array<i32>} : memref<72x256xf32, #tpu.memory_space<vmem>>, vector<8x256xf32>,
    %c239_i32 = arith.constant 239 : i32
    %47 = tpu.dynamic_rotate %7 by %c239_i32 dim 1 : vector<8x256xf32>, i32 -> vector<8x256xf32>
    %c8_24 = arith.constant 8 : index
    %c0_25 = arith.constant 0 : index
    %48 = vector.load %arg5[%c8_24, %c0_25] : memref<9x256xf32, #tpu.memory_space<vmem>>, vector<1x256xf32>
    %49 = vector.broadcast %48 : vector<1x256xf32> to vector<8x256xf32>
    %50 = arith.mulf %47, %49 : vector<8x256xf32>
    %c64 = arith.constant 64 : index
    %c0_26 = arith.constant 0 : index
    %51 = vector.load %arg10[%c64, %c0_26] : memref<72x256xf32, #tpu.memory_space<vmem>>, vector<8x256xf32>
    tpu.vector_store %arg10[%c64, %c0_26], %50 {strides = array<i32>} : memref<72x256xf32, #tpu.memory_space<vmem>>, vector<8x256xf32>,
    %c0_27 = arith.constant 0 : index
    %c0_28 = arith.constant 0 : index
    %52 = vector.load %arg3[%c0_27, %c0_28] : memref<8x72xf32, #tpu.memory_space<vmem>>, vector<8x72xf32>
    %c0_29 = arith.constant 0 : index
    %c0_30 = arith.constant 0 : index
    %53 = vector.load %arg10[%c0_29, %c0_30] : memref<72x256xf32, #tpu.memory_space<vmem>>, vector<72x256xf32>
    %cst_31 = arith.constant dense<0.000000e+00> : vector<8x256xf32>
    %54 = tpu.matmul %52, %53, %cst_31 {dimension_numbers = #tpu.dot_dimension_numbers<[1], [0], [0], [1], [0, 0, 1, 1], [], []>} : vector<8x72xf32>, vector<72x256xf32>, vector<8x256xf32> -> vector<8x256xf32>
    %c0_32 = arith.constant 0 : index
    %c0_33 = arith.constant 0 : index
    %55 = vector.load %arg7[%c0_32, %c0_33] : memref<8x1xf32, #tpu.memory_space<vmem>>, vector<8x1xf32>
    %56 = vector.broadcast %55 : vector<8x1xf32> to vector<8x256xf32>
    %57 = arith.addf %54, %56 : vector<8x256xf32>
    %cst_34 = arith.constant 0.000000e+00 : f32
    %58 = vector.broadcast %cst_34 : f32 to vector<8x256xf32>
    %59 = arith.maximumf %57, %58 : vector<8x256xf32>
    %c0_35 = arith.constant 0 : index
    %c0_36 = arith.constant 0 : index
    %60 = vector.load %arg4[%c0_35, %c0_36] : memref<4x8xf32, #tpu.memory_space<vmem>>, vector<4x8xf32>
    %cst_37 = arith.constant dense<0.000000e+00> : vector<4x256xf32>
    %61 = tpu.matmul %60, %59, %cst_37 {dimension_numbers = #tpu.dot_dimension_numbers<[1], [0], [0], [1], [0, 0, 1, 1], [], []>} : vector<4x8xf32>, vector<8x256xf32>, vector<4x256xf32> -> vector<4x256xf32>
    %c0_38 = arith.constant 0 : index
    %c0_39 = arith.constant 0 : index
    %62 = vector.load %arg8[%c0_38, %c0_39] : memref<4x1xf32, #tpu.memory_space<vmem>>, vector<4x1xf32>
    %63 = vector.broadcast %62 : vector<4x1xf32> to vector<4x256xf32>
    %64 = arith.addf %61, %63 : vector<4x256xf32>
    %c0_40 = arith.constant 0 : index
    %c0_41 = arith.constant 0 : index
    %65 = vector.load %arg1[%c0_40, %c0_41] : memref<4x256xf32, #tpu.memory_space<vmem>>, vector<4x256xf32>
    %66 = arith.addf %64, %65 : vector<4x256xf32>
    %cst_42 = arith.constant 0.000000e+00 : f32
    %67 = vector.broadcast %cst_42 : f32 to vector<4x256xf32>
    %68 = arith.maximumf %66, %67 : vector<4x256xf32>
    %c0_43 = arith.constant 0 : index
    %c0_44 = arith.constant 0 : index
    %69 = vector.load %arg9[%c0_43, %c0_44] : memref<4x256xf32, #tpu.memory_space<vmem>>, vector<4x256xf32>
    tpu.vector_store %arg9[%c0_43, %c0_44], %68 {strides = array<i32>} : memref<4x256xf32, #tpu.memory_space<vmem>>, vector<4x256xf32>,
    return
  }
  func.func @transform_0(%arg0: i32) -> (i32, i32) {
    %c0_i32 = arith.constant 0 : i32
    %c0_i32_0 = arith.constant 0 : i32
    return %c0_i32, %arg0 : i32, i32
  }
  func.func @transform_1(%arg0: i32) -> (i32, i32) {
    %c0_i32 = arith.constant 0 : i32
    %c0_i32_0 = arith.constant 0 : i32
    %c0_i32_1 = arith.constant 0 : i32
    return %c0_i32, %c0_i32_0 : i32, i32
  }
  func.func @transform_2(%arg0: i32) -> (i32, i32) {
    %c0_i32 = arith.constant 0 : i32
    %c0_i32_0 = arith.constant 0 : i32
    %c0_i32_1 = arith.constant 0 : i32
    return %c0_i32, %c0_i32_0 : i32, i32
  }
  func.func @transform_3(%arg0: i32) -> (i32, i32) {
    %c0_i32 = arith.constant 0 : i32
    %c0_i32_0 = arith.constant 0 : i32
    %c0_i32_1 = arith.constant 0 : i32
    return %c0_i32, %c0_i32_0 : i32, i32
  }
  func.func @transform_4(%arg0: i32) -> (i32, i32) {
    %c0_i32 = arith.constant 0 : i32
    %c0_i32_0 = arith.constant 0 : i32
    %c0_i32_1 = arith.constant 0 : i32
    return %c0_i32, %c0_i32_0 : i32, i32
  }
  func.func @transform_5(%arg0: i32) -> (i32, i32) {
    %c0_i32 = arith.constant 0 : i32
    %c0_i32_0 = arith.constant 0 : i32
    %c0_i32_1 = arith.constant 0 : i32
    return %c0_i32, %c0_i32_0 : i32, i32
  }
  func.func @transform_6(%arg0: i32) -> (i32, i32) {
    %c0_i32 = arith.constant 0 : i32
    %c0_i32_0 = arith.constant 0 : i32
    %c0_i32_1 = arith.constant 0 : i32
    return %c0_i32, %c0_i32_0 : i32, i32
  }
  func.func @transform_7(%arg0: i32) -> (i32, i32) {
    %c0_i32 = arith.constant 0 : i32
    %c0_i32_0 = arith.constant 0 : i32
    %c0_i32_1 = arith.constant 0 : i32
    return %c0_i32, %c0_i32_0 : i32, i32
  }
  func.func @transform_8(%arg0: i32) -> (i32, i32) {
    %c0_i32 = arith.constant 0 : i32
    %c0_i32_0 = arith.constant 0 : i32
    return %c0_i32, %arg0 : i32, i32
  }
}

</mosaic_0001>

<bundles_post_ra>
// kernel: identity_block.1
= control target key start
LH: loop header
LB: loop body
LE: loop exit
PB: predicated region body
PF: predicated region fallthrough
CT: control target
= control target key end

     0   :  { %s831_s27 = smov 0   ;;  %s935_s0 = inlined_call_operand.vmem [shape: f32[4,512], index: 0, kind: input, shape index: {}]   ;;  %s936_s1 = inlined_call_operand.vmem [shape: f32[8,4], index: 1, kind: input, shape index: {}]   ;;  %s937_s2 = inlined_call_operand.vmem [shape: f32[8,72], index: 2, kind: input, shape index: {}]   ;;  %s938_s3 = inlined_call_operand.vmem [shape: f32[4,8], index: 3, kind: input, shape index: {}]   ;;  %s939_s4 = inlined_call_operand.vmem [shape: f32[9,256], index: 4, kind: input, shape index: {}]   ;;  %s940_s5 = inlined_call_operand.vmem [shape: f32[8,1], index: 5, kind: input, shape index: {}]   ;;  %s941_s6 = inlined_call_operand.vmem [shape: f32[8,1], index: 6, kind: input, shape index: {}]   ;;  %s942_s7 = inlined_call_operand.vmem [shape: f32[4,1], index: 7, kind: input, shape index: {}]   ;;  %s943_s8 = inlined_call_operand.vmem [shape: f32[4,512], index: 8, kind: output, shape index: {}]  }
   0x1 LB: > { %s723_s28 = sadd.s32 4294967295, %s775_s27   ;;  %p727_p0 = scmp.ge.s32.totalorder %s775_s27, 1  ;;  %s775_s27 = sphi %s831_s27, %s18_s27  }
   0x2   : > { %p263_p1 = scmp.lt.s32.totalorder %s775_s27, 3 }
   0x4   : > { %p264_p2 = pnand %p727_p0, %p263_p1 }
   0x5   : > { %s728_s29 = sshll.u32 (!%p264_p2), %s723_s28, 1  ;;  %s778_s16 = smov (!%p264_p2), 112  }
   0x6   : > { %267 = sbr.rel (%p264_p2) target bundleno = 586 (0x24a), region = 52  ;;  %p298_p3 = scmp.lt.s32.totalorder (!%p264_p2), %s728_s29, 3 }
   0x7   : > { %s779_s17 = smov (!%p264_p2), 111   ;;  %s780_s18 = smov (!%p264_p2), 113  }
   0x8   : > { %s781_s19 = smov (!%p264_p2), 127   ;;  %s782_s20 = smov (!%p264_p2), 1  }
   0x9   : > { %s783_s21 = smov (!%p264_p2), 15   ;;  %s784_s22 = smov (!%p264_p2), 16  }
   0xa   : > { %s785_s23 = smov (!%p264_p2), 17  }
   0xb   : > { %v311_v0 = vld [vmem:[%s940_s5] sm:$0xff]  ;;  %v777_v1 = vmov 0   ;;  %s945_s29 = smov (!%p298_p3, %s728_s29), 3  ;;  %vm325_vm0 = vcmask 1043456   ;;  %vm321_vm1 = vcmask 31744   ;;  %v376_v14 = vlaneseq }
   0xc   : > { %767 = vset.pattern.permute.xlu0 %v777_v1  ;;  %768 = vset.pattern.permute.xlu2 %v777_v1  ;;  %s729_s10 = sshll.u32 %s945_s29, 2  ;;  %v309_v3 = vld [vmem:[%s936_s1] sm:$0xff]  ;;  %v743_v17 = vld [vmem:[%s939_s4 + $0x10] ss:$8 sm:$0x3]  ;;  %vm553_vm10 = vcmask 588800  }
   0xd   : > { %314 = vperm.xlu0 %767, %v311_v0   ;;  %s301_s13 = scalar_lea.vmem %s935_s0, %s729_s10  ;;  %v600_v13 = vld [vmem:[%s942_s7] sm:$0xf]  ;;  %v878_v16 = vand.u32 127, %v376_v14  ;;  %v520_v18 = vperm.slane %v743_v17, 0  ;;  %v521_v19 = vperm.slane %v743_v17, 1  ;;  %vm606_vm11 = vcmask 64512   ;;  %s307_s14 = scalar_lea.vmem %s943_s8, %s729_s10 }
   0xe   : > { %v310_v2 = vld [vmem:[%s301_s13] sm:$0xff] }
   0xf   : > { %318 = vst [vmem:[#allocation1] ss:$2 sm:$0xff] %v310_v2  ;;  %vm514_vm2 = vcmp.lt.s32.totalorder %v878_v16, 111  ;;  %v742_v27 = vld [vmem:[%s939_s4 + $0x7] ss:$8 sm:$0x3] }
  0x10   : > { %v741_v28 = vld [vmem:[%s939_s4 + $0x6] ss:$8 sm:$0x3]  ;;  %vm496_vm3 = vcmp.lt.s32.totalorder %v878_v16, 112  ;;  %v502_v29 = vperm.slane %v742_v27, 0  ;;  %v503_v30 = vperm.slane %v742_v27, 1 }
  0x11   : > { %vm478_vm4 = vcmp.lt.s32.totalorder %v878_v16, 113  ;;  %v484_v32 = vperm.slane %v741_v28, 0  ;;  %v485_v33 = vperm.slane %v741_v28, 1  ;;  %v740_v41 = vld [vmem:[%s939_s4 + $0x5] ss:$8 sm:$0x3] }
  0x12   : > { %v739_v45 = vld [vmem:[%s939_s4 + $0x4] ss:$8 sm:$0x3]  ;;  %vm460_vm5 = vcmp.lt.s32.totalorder %v878_v16, 127  ;;  %v466_v47 = vperm.slane %v740_v41, 0  ;;  %v467_v48 = vperm.slane %v740_v41, 1 }
  0x13   : > { %v547_v46 = vld [vmem:[%s941_s6] sm:$0xff]  ;;  %v448_v50 = vperm.slane %v739_v45, 0  ;;  %v449_v51 = vperm.slane %v739_v45, 1  ;;  %vm431_vm6 = vcmp.lt.s32.totalorder %v878_v16, 1  ;;  %vm413_vm7 = vcmp.lt.s32.totalorder %v878_v16, 15 }
  0x14   : > { %v738_v57 = vld [vmem:[%s939_s4 + $0x3] ss:$8 sm:$0x3]  ;;  %v737_v60 = vld [vmem:[%s939_s4 + $0x2] ss:$8 sm:$0x3] }
  0x15   : > { %v437_v62 = vperm.slane %v738_v57, 0  ;;  %v438_v63 = vperm.slane %v738_v57, 1  ;;  %v419_v1 = vperm.slane %v737_v60, 0  ;;  %vm395_vm8 = vcmp.lt.s32.totalorder %v878_v16, 16 }
  0x16   : > { %v319_v4 = vld.sshfl [vmem:[#allocation1] sm:$0xff pattern:$0x75316420]  ;;  %v320_v5 = vld.sshfl [vmem:[#allocation1 + $0x8] sm:$0xff pattern:$0x75316420] }
  0x17   : > { %732 = vmatpush.msk.msra.mxu0 %vm325_vm0, %v319_v4  ;;  %734 = vmatpush.msk.msra.mxu1 %vm325_vm0, %v320_v5  ;;  %652 = vst [vmem:[#allocation1] ss:$2 sm:$0xff] %v310_v2  ;;  %v420_v2 = vperm.slane %v737_v60, 1  ;;  %vm378_vm9 = vcmp.lt.s32.totalorder %v878_v16, 17 }
  0x18   : > { %733 = vmatmul.msk.f32.vlgmr.msra.gmra.mxu0 %vm321_vm1, %v309_v3  ;;  %735 = vmatmul.msk.f32.vlgmr.msra.gmra.mxu1 %vm321_vm1, %v309_v3 }
  0x1e   : > { %v653_v41 = vld.sshfl [vmem:[#allocation1] sm:$0xff pattern:$0x75316420] }
  0x7f   : > { %v315_v6 = vpop.permute.xlu0 %314 }
  0x95   : > { %v347_v7 = vpop.f32.mrf.mxu0  ;;  %v367_v8 = vpop.f32.mrf.mxu1 }
  0x96   : > { %v348_v9 = vadd.f32 %v347_v7, %v315_v6  ;;  %v368_v10 = vadd.f32 %v367_v8, %v315_v6 }
  0x98   : > { %v855_v11 = vmax.f32 %v348_v9, 0.0  ;;  %v857_v12 = vmax.f32 %v368_v10, 0.0  ;;  %v736_v10 = vld [vmem:[%s939_s4 + $0x1] ss:$8 sm:$0x3] }
  0x99   : > { %v402_v14 = vperm.slane %v736_v10, 1 }
  0x9a   : > { %494 = vrot.lane.b32.xlu2 %v857_v12, %s778_s16  ;;  %512 = vrot.lane.b32.xlu1 %v857_v12, %s779_s17  ;;  %v452_v58 = vmul.f32 %v448_v50, %v855_v11  ;;  %v453_v59 = vmul.f32 %v449_v51, %v857_v12 }
  0x9b   : > { %510 = vrot.lane.b32.xlu0 %v855_v11, %s779_s17 }
  0xa2   : > { %474 = vrot.lane.b32.xlu2 %v855_v11, %s780_s18  ;;  %492 = vrot.lane.b32.xlu1 %v855_v11, %s778_s16 }
  0xa3   : > { %476 = vrot.lane.b32.xlu0 %v857_v12, %s780_s18 }
  0xaa   : > { %458 = vrot.lane.b32.xlu2 %v857_v12, %s781_s19  ;;  %456 = vrot.lane.b32.xlu1 %v855_v11, %s781_s19 }
  0xab   : > { %427 = vrot.lane.b32.xlu0 %v855_v11, %s782_s20 }
  0xb2   : > { %409 = vrot.lane.b32.xlu2 %v855_v11, %s783_s21  ;;  %429 = vrot.lane.b32.xlu1 %v857_v12, %s782_s20 }
  0xb3   : > { %411 = vrot.lane.b32.xlu0 %v857_v12, %s783_s21 }
  0xba   : > { %393 = vrot.lane.b32.xlu2 %v857_v12, %s784_s22  ;;  %391 = vrot.lane.b32.xlu1 %v855_v11, %s784_s22 }
  0xbb   : > { %372 = vrot.lane.b32.xlu0 %v855_v11, %s785_s23 }
  0xc2   : > { %374 = vrot.lane.b32.xlu1 %v857_v12, %s785_s23  ;;  %550 = vperm.xlu2 %768, %v547_v46  }
  0xc3   : > { %603 = vperm.xlu0 %767, %v600_v13   ;;  %v401_v13 = vperm.slane %v736_v10, 0 }
  0xf4   : > { %v495_v15 = vpop.permute.xlu2 %494 }
  0xfc   : > { %v475_v22 = vpop.permute.xlu2 %474 }
 0x104   : > { %v459_v42 = vpop.permute.xlu2 %458 }
 0x10c   : > { %v513_v20 = vpop.permute.xlu1 %512  ;;  %v410_v61 = vpop.permute.xlu2 %409 }
 0x10d   : > { %v511_v21 = vpop.permute.xlu0 %510 }
 0x10e   : > { %v515_v23 = vsel %vm514_vm2, %v511_v21, %v513_v20  ;;  %v516_v24 = vsel %vm514_vm2, %v513_v20, %v511_v21 }
 0x10f   : > { %v524_v25 = vmul.f32 %v520_v18, %v515_v23  ;;  %v525_v26 = vmul.f32 %v521_v19, %v516_v24 }
 0x111   : > { %564 = vmatpush.msra.mxu2 %v524_v25  ;;  %584 = vmatpush.msra.mxu3 %v525_v26 }
 0x114   : > { %v493_v31 = vpop.permute.xlu1 %492 }
 0x115   : > { %v497_v34 = vsel %vm496_vm3, %v493_v31, %v495_v15  ;;  %v498_v35 = vsel %vm496_vm3, %v495_v15, %v493_v31  ;;  %v477_v36 = vpop.permute.xlu0 %476  ;;  %v394_v15 = vpop.permute.xlu2 %393  ;;  %v528_v31 = vld [vmem:[%s937_s2] sm:$0xff] }
 0x116   : > { %v479_v37 = vsel %vm478_vm4, %v475_v22, %v477_v36  ;;  %v480_v38 = vsel %vm478_vm4, %v477_v36, %v475_v22  ;;  %v506_v39 = vmul.f32 %v502_v29, %v497_v34  ;;  %v507_v40 = vmul.f32 %v503_v30, %v498_v35  ;;  %v381_v22 = vld [vmem:[%s939_s4] ss:$8 sm:$0x3] }
 0x117   : > { %v488_v43 = vmul.f32 %v484_v32, %v479_v37  ;;  %v489_v44 = vmul.f32 %v485_v33, %v480_v38  ;;  %v383_v23 = vperm.slane %v381_v22, 0  ;;  %v384_v24 = vperm.slane %v381_v22, 1  ;;  %v599_v38 = vld [vmem:[%s938_s3] sm:$0xf] }
 0x118   : > { %565 = vmatpush.msra.mxu2 %v506_v39  ;;  %585 = vmatpush.msra.mxu3 %v507_v40 }
 0x11a   : > { %566 = vmatpush.msra.mxu2 %v488_v43  ;;  %586 = vmatpush.msra.mxu3 %v489_v44  ;;  %v654_v43 = vld.sshfl [vmem:[#allocation1 + $0x8] sm:$0xff pattern:$0x75316420] }
 0x11c   : > { %v457_v49 = vpop.permute.xlu1 %456 }
 0x11d   : > { %v461_v52 = vsel %vm460_vm5, %v457_v49, %v459_v42  ;;  %v462_v53 = vsel %vm460_vm5, %v459_v42, %v457_v49  ;;  %v428_v54 = vpop.permute.xlu0 %427  ;;  %v551_v32 = vpop.permute.xlu2 %550 }
 0x11e   : > { %v470_v55 = vmul.f32 %v466_v47, %v461_v52  ;;  %v471_v56 = vmul.f32 %v467_v48, %v462_v53 }
 0x120   : > { %567 = vmatpush.msra.mxu2 %v470_v55  ;;  %587 = vmatpush.msra.mxu3 %v471_v56 }
 0x122   : > { %568 = vmatpush.msra.mxu2 %v452_v58  ;;  %588 = vmatpush.msra.mxu3 %v453_v59 }
 0x124   : > { %v430_v0 = vpop.permute.xlu1 %429 }
 0x125   : > { %v432_v3 = vsel %vm431_vm6, %v428_v54, %v430_v0  ;;  %v433_v4 = vsel %vm431_vm6, %v430_v0, %v428_v54  ;;  %v412_v5 = vpop.permute.xlu0 %411 }
 0x126   : > { %v414_v6 = vsel %vm413_vm7, %v410_v61, %v412_v5  ;;  %v415_v7 = vsel %vm413_vm7, %v412_v5, %v410_v61  ;;  %v441_v8 = vmul.f32 %v437_v62, %v433_v4  ;;  %v442_v9 = vmul.f32 %v438_v63, %v432_v3 }
 0x127   : > { %v423_v11 = vmul.f32 %v419_v1, %v415_v7  ;;  %v424_v12 = vmul.f32 %v420_v2, %v414_v6 }
 0x128   : > { %569 = vmatpush.msra.mxu2 %v441_v8  ;;  %589 = vmatpush.msra.mxu3 %v442_v9 }
 0x12a   : > { %570 = vmatpush.msra.mxu2 %v423_v11  ;;  %590 = vmatpush.msra.mxu3 %v424_v12 }
 0x12c   : > { %v392_v17 = vpop.permute.xlu1 %391 }
 0x12d   : > { %v396_v18 = vsel %vm395_vm8, %v392_v17, %v394_v15  ;;  %v397_v19 = vsel %vm395_vm8, %v394_v15, %v392_v17  ;;  %v373_v25 = vpop.permute.xlu0 %372 }
 0x12e   : > { %v405_v20 = vmul.f32 %v401_v13, %v397_v19  ;;  %v406_v21 = vmul.f32 %v402_v14, %v396_v18 }
 0x130   : > { %571 = vmatpush.msra.mxu2 %v405_v20  ;;  %591 = vmatpush.msra.mxu3 %v406_v21 }
 0x134   : > { %v375_v26 = vpop.permute.xlu1 %374 }
 0x135   : > { %v379_v27 = vsel %vm378_vm9, %v373_v25, %v375_v26  ;;  %v380_v28 = vsel %vm378_vm9, %v375_v26, %v373_v25  ;;  %v604_v39 = vpop.permute.xlu0 %603 }
 0x136   : > { %v387_v29 = vmul.f32 %v383_v23, %v380_v28  ;;  %v388_v30 = vmul.f32 %v384_v24, %v379_v27 }
 0x138   : > { %572 = vmatpush.msra.mxu2 %v387_v29  ;;  %592 = vmatpush.msra.mxu3 %v388_v30 }
 0x139   : > { %744 = vmatmul.msk.f32.vlgmr.msra.gmra.mxu2 %vm553_vm10, %v528_v31  ;;  %745 = vmatmul.msk.f32.vlgmr.msra.gmra.mxu3 %vm553_vm10, %v528_v31 }
 0x1bc   : > { %v574_v33 = vpop.f32.mrf.mxu2  ;;  %v594_v16 = vpop.f32.mrf.mxu3 }
 0x1bd   : > { %v575_v34 = vadd.f32 %v574_v33, %v551_v32  ;;  %v595_v35 = vadd.f32 %v594_v16, %v551_v32 }
 0x1bf   : > { %v597_v36 = vmax.f32 %v575_v34, 0.0  ;;  %v598_v37 = vmax.f32 %v595_v35, 0.0 }
 0x1c1   : > { %625 = vmatpush.msrb.mxu0 %v597_v36  ;;  %645 = vmatpush.msrb.mxu1 %v598_v37 }
 0x1c2   : > { %746 = vmatmul.msk.f32.vlgmr.msrb.gmra.mxu0 %vm606_vm11, %v599_v38  ;;  %747 = vmatmul.msk.f32.vlgmr.msrb.gmra.mxu1 %vm606_vm11, %v599_v38 }
 0x23f   : > { %v627_v40 = vpop.f32.mrf.mxu0  ;;  %v647_v42 = vpop.f32.mrf.mxu1 }
 0x240   : > { %v628_v44 = vadd.f32 %v627_v40, %v604_v39  ;;  %v648_v45 = vadd.f32 %v647_v42, %v604_v39 }
 0x242   : > { %v657_v46 = vadd.f32 %v653_v41, %v628_v44  ;;  %v658_v47 = vadd.f32 %v654_v43, %v648_v45 }
 0x244   : > { %v660_v48 = vmax.f32 %v658_v47, 0.0  ;;  %v659_v49 = vmax.f32 %v657_v46, 0.0 }
 0x246   : > { %v663_v50 = vrot.slane %v660_v48, 4 }
 0x248   : > { %v664_v51 = vsel %vm325_vm0, %v659_v49, %v663_v50 }
 0x249   : > { %666 = vst [vmem:[%s307_s14] sm:$0xff] %v664_v51 }
 0x24a PF: > { %s18_s27 = sadd.s32 1, %s775_s27  }
 0x24b   : > { %p15_p4 = scmp.ge.s32.totalorder %s18_s27, 4  }
 0x24d   :  { %17 = sbr.rel (!%p15_p4) target bundleno = 1 (0x1), region = 90 }

</bundles_post_ra>
